<compile_context>
chip_gen: v7x
topology: tpu7x:2x2x1
jax: 0.10.0
libtpu: 0.0.40
codegen_flags: <defaults>
</compile_context>

<pallas_src>
import math
from functools import partial

import jax
import jax.numpy as jnp
from jax.experimental import pallas as pl
from jax.experimental.pallas import tpu as pltpu

_TARGET_BLOCK_BYTES = 2 * 1024 * 1024   # ~2 MiB x-block -> ~9 MiB VMEM with double-buffering
_MIN_PALLAS_ELEMS = 1 << 14             # below this, a fused XLA add is faster than a kernel launch


def make_positional_encoding(d_model: int, max_len: int = 512) -> jnp.ndarray:
    """Deterministic buffer setup, identical to the PyTorch __init__."""
    position = jnp.arange(0, max_len, dtype=jnp.float32)[:, None]          # (max_len, 1)
    div_term = jnp.exp(
        jnp.arange(0, d_model, 2, dtype=jnp.float32) * (-math.log(10000.0) / d_model)
    )                                                                       # (d_model//2,)
    pe = jnp.zeros((max_len, d_model), dtype=jnp.float32)
    pe = pe.at[:, 0::2].set(jnp.sin(position * div_term))
    pe = pe.at[:, 1::2].set(jnp.cos(position * div_term))
    # unsqueeze(0).transpose(0, 1) -> (max_len, 1, d_model)
    return pe[:, None, :]


def _pos_enc_kernel(x_ref, pe_ref, o_ref, *, batch: int):
    # x_ref / o_ref: (TS, B*D) ; pe_ref: (TS, D)
    pe_rows = pe_ref[...]
    if batch > 1:
        # Repeat the D-wide positional row once per batch slot along lanes so it
        # lines up with the row-major (B, D) -> B*D flattening of x.  For the
        # memory-bound add this lane work rides on otherwise-idle VPU/XLU slots.
        pe_rows = jnp.concatenate([pe_rows] * batch, axis=1)                # (TS, B*D)
    o_ref[...] = (x_ref[...] + pe_rows).astype(o_ref.dtype)


def _pick_seq_tile(seq_len: int, row_bytes: int) -> int:
    """Sequence tile: multiple of 8 rows, ~_TARGET_BLOCK_BYTES per x block."""
    if seq_len <= 8:
        return seq_len
    ts = max(8, (_TARGET_BLOCK_BYTES // max(row_bytes, 1)) // 8 * 8)
    return int(min(ts, seq_len))    # == seq_len (full dim) or a multiple of 8


@partial(jax.jit, static_argnames=("block_rows", "force_pallas"))
def positional_encoding_forward(x, pe, block_rows=None, force_pallas=False):
    """x: (S, B, D); pe: (max_len, 1, D).  Returns x + pe[:S]."""
    S, B, D = x.shape
    max_len = pe.shape[0]
    if S > max_len:
        raise ValueError(f"seq_len {S} exceeds positional-encoding max_len {max_len}")

    pe_s = pe.reshape(max_len, D).astype(x.dtype)[:S]                       # (S, D)

    # Tiny-input bailout: per-step + launch overhead dominates; let XLA fuse it.
    if (not force_pallas) and (S * B * D < _MIN_PALLAS_ELEMS):
        return x + pe_s[:, None, :]

    itemsize = jnp.dtype(x.dtype).itemsize
    row_bytes = B * D * itemsize
    if block_rows is not None:
        ts = int(block_rows)
        assert ts == S or ts % 8 == 0, "block_rows must be a multiple of 8 (or == S)"
    else:
        ts = _pick_seq_tile(S, row_bytes)

    # Lane/sublane-dense 2-D view: free row-major reshape, no data movement.
    x2 = x.reshape(S, B * D)

    # VMEM budget: x + out blocks double-buffered, plus the small pe stream.
    block_bytes = ts * B * D * itemsize
    pe_block_bytes = ts * D * itemsize
    vmem_need = 4 * block_bytes + 2 * pe_block_bytes
    vmem_limit = int(min(64 * 1024 * 1024, max(32 * 1024 * 1024, 2 * vmem_need)))

    grid = (pl.cdiv(S, ts),)

    out2 = pl.pallas_call(
        partial(_pos_enc_kernel, batch=B),
        out_shape=jax.ShapeDtypeStruct((S, B * D), x.dtype),
        grid_spec=pltpu.PrefetchScalarGridSpec(
            num_scalar_prefetch=0,
            grid=grid,
            in_specs=[
                pl.BlockSpec((ts, B * D), lambda i: (i, 0)),   # x tile (lane-dense)
                pl.BlockSpec((ts, D), lambda i: (i, 0)),       # pe rows for this tile
            ],
            out_specs=pl.BlockSpec((ts, B * D), lambda i: (i, 0)),
        ),
        compiler_params=pltpu.CompilerParams(
            dimension_semantics=("parallel",),   # independent seq tiles -> v7x dual-TC
            vmem_limit_bytes=vmem_limit,
        ),
        input_output_aliases={0: 0},             # write the result in place over x2
    )(x2, pe_s)

    return out2.reshape(S, B, D)


if __name__ == "__main__":
    # --- small shape matching the module's usage (seq-first) ---------------
    seq_len, batch, d_model, max_len = 8, 2, 32, 512
    key = jax.random.PRNGKey(0)
    x = jax.random.normal(key, (seq_len, batch, d_model), dtype=jnp.float32)
    pe = make_positional_encoding(d_model, max_len=max_len)

    ref = x + pe[:seq_len, :]
    out = positional_encoding_forward(x, pe, force_pallas=True)   # exercise the kernel
    out = jax.block_until_ready(out)
    assert out.shape == (seq_len, batch, d_model)
    assert jnp.allclose(out, ref, atol=1e-6, rtol=1e-6), "mismatch vs reference (toy shape)"

    # --- modest shape with a multi-step grid and a partial final block -----
    s2, b2, d2 = 200, 4, 128
    x_big = jax.random.normal(jax.random.PRNGKey(1), (s2, b2, d2), dtype=jnp.float32)
    pe_big = make_positional_encoding(d2, max_len=max_len)
    ref_big = x_big + pe_big[:s2, :]
    out_big = jax.block_until_ready(
        positional_encoding_forward(x_big, pe_big, block_rows=64)  # grid = 4, last block partial
    )
    assert jnp.allclose(out_big, ref_big, atol=1e-6, rtol=1e-6), "mismatch vs reference (tiled)"

    print("KERNEL_OK")
</pallas_src>

<mosaic_0001>
module attributes {stable_mosaic.version = 11 : i64} {
  func.func @_pos_enc_kernel(%arg0: i32, %arg1: memref<8x64xf32, #tpu.memory_space<vmem>>, %arg2: memref<8x32xf32, #tpu.memory_space<vmem>>, %arg3: memref<8x64xf32, #tpu.memory_space<vmem>>) attributes {dimension_semantics = [#tpu.dimension_semantics<parallel>], iteration_bounds = array<i64: 1>, scalar_prefetch = 0 : i64, scratch_operands = 0 : i64, tpu.core_type = #tpu.core_type<tc>, window_params = [{transform_indices = @transform_0, window_bounds = array<i64: 8, 64>}, {transform_indices = @transform_1, window_bounds = array<i64: 8, 32>}, {transform_indices = @transform_2, window_bounds = array<i64: 8, 64>}]} {
    %c0 = arith.constant 0 : index
    %c0_0 = arith.constant 0 : index
    %0 = vector.load %arg2[%c0, %c0_0] : memref<8x32xf32, #tpu.memory_space<vmem>>, vector<8x32xf32>
    %1 = tpu.concatenate %0, %0 in 1 : vector<8x32xf32>, vector<8x32xf32> -> vector<8x64xf32>
    %c0_1 = arith.constant 0 : index
    %c0_2 = arith.constant 0 : index
    %2 = vector.load %arg1[%c0_1, %c0_2] : memref<8x64xf32, #tpu.memory_space<vmem>>, vector<8x64xf32>
    %3 = arith.addf %2, %1 : vector<8x64xf32>
    %c0_3 = arith.constant 0 : index
    %c0_4 = arith.constant 0 : index
    %4 = vector.load %arg3[%c0_3, %c0_4] : memref<8x64xf32, #tpu.memory_space<vmem>>, vector<8x64xf32>
    tpu.vector_store %arg3[%c0_3, %c0_4], %3 {strides = array<i32>} : memref<8x64xf32, #tpu.memory_space<vmem>>, vector<8x64xf32>,
    return
  }
  func.func @transform_0(%arg0: i32) -> (i32, i32) {
    %c0_i32 = arith.constant 0 : i32
    %c0_i32_0 = arith.constant 0 : i32
    return %arg0, %c0_i32 : i32, i32
  }
  func.func @transform_1(%arg0: i32) -> (i32, i32) {
    %c0_i32 = arith.constant 0 : i32
    %c0_i32_0 = arith.constant 0 : i32
    return %arg0, %c0_i32 : i32, i32
  }
  func.func @transform_2(%arg0: i32) -> (i32, i32) {
    %c0_i32 = arith.constant 0 : i32
    %c0_i32_0 = arith.constant 0 : i32
    return %arg0, %c0_i32 : i32, i32
  }
}

</mosaic_0001>

<bundles_post_ra>
// kernel: positional_encoding_forward.1
= control target key start
LH: loop header
LB: loop body
LE: loop exit
PB: predicated region body
PF: predicated region fallthrough
CT: control target
= control target key end

     0   :  { %s27_s11 = smov 32   ;;  %vm16_vm0 = vcmask 261120   ;;  %vm20_vm1 = vcmask 523264   ;;  %s52_s1 = inlined_call_operand.vmem [shape: f32[8,32], index: 1, kind: input, shape index: {}]   ;;  %s53_s0 = inlined_call_operand.vmem [shape: f32[8,64], index: 0, kind: input, shape index: {}, may-alias: {0,2}]   ;;  %s54_s2 = inlined_call_operand.vmem [shape: f32[8,64], index: 2, kind: output, shape index: {}, may-alias: {0,2}]  }
   0x1   :  { %v11_v0 = vld [vmem:[%s52_s1] sm:$0xff] }
   0x2   :  { %13 = vrot.lane.b32.xlu0 %v11_v0, %s27_s11  ;;  %v18_v1 = vld [vmem:[%s53_s0] sm:$0xff] }
  0x74   :  { %v14_v2 = vpop.permute.xlu0 %13 }
  0x75   :  { %v17_v3 = vsel %vm16_vm0, %v11_v0, %v14_v2 }
  0x76   :  { %v19_v4 = vadd.f32 %v18_v1, %v17_v3 }
  0x78   :  { %21 = vst.msk [vmem:[%s54_s2] sm:$0xff] %vm20_vm1, %v19_v4 }

</bundles_post_ra>
